<compile_context>
chip_gen: v6e
topology: v6e:2x2x1
jax: 0.10.0
libtpu: 0.0.40
codegen_flags: <defaults>
</compile_context>

<pallas_src>
import functools

import numpy as np
import jax
import jax.numpy as jnp
from jax import lax
from jax.experimental import pallas as pl
from jax.experimental.pallas import tpu as pltpu


# --------------------------------------------------------------------------------------
# Path 1: HBM-resident table, DMA row-gather (GloVe-scale vocabularies).
# --------------------------------------------------------------------------------------
def _dma_gather_kernel(ids_ref, table_hbm, out_ref, sem, *, tm, nslots):
    """Gather `tm` embedding rows (one token tile) straight into the output block.

    ids_ref  : (T_pad,)  int32 in SMEM (scalar prefetch, pre-clamped in the wrapper)
    table_hbm: (V, Dp)   f32 ref in HBM (memory_space=pl.ANY)
    out_ref  : (tm, Dp)  f32 output block in VMEM (DMA destination, lane-dense)
    sem      : (nslots,) rotating pool of DMA semaphores
    """
    base = pl.program_id(0) * tm

    def start_row(t, slot):
        row = ids_ref[base + t]                      # clamp already done in wrapper
        pltpu.make_async_copy(
            table_hbm.at[pl.ds(row, 1), :],          # (1, Dp) row in HBM
            out_ref.at[pl.ds(t, 1), :],              # straight into the output block
            sem.at[slot],
        ).start()

    def wait_row(t, slot):
        # Placeholder src row 0: only the transfer size / dst / semaphore matter for wait.
        pltpu.make_async_copy(
            table_hbm.at[pl.ds(0, 1), :],
            out_ref.at[pl.ds(t, 1), :],
            sem.at[slot],
        ).wait()

    n_live = min(nslots, tm)

    # Prologue: fill the slot pool (static unroll keeps the whole burst visible to LLO).
    for t in range(n_live):
        start_row(t, t)

    # Steady state: retire the oldest copy on a slot, then immediately reuse the slot.
    # Keeps `nslots` row DMAs in flight with a fixed-size semaphore pool.
    if tm > nslots:
        @pl.loop(nslots, tm)
        def _(t):
            slot = t & (nslots - 1)                  # nslots is a power of two
            wait_row(t - nslots, slot)
            start_row(t, slot)

    # Epilogue: drain the last n_live in-flight copies (they occupy distinct slots).
    # All waits complete before the body ends, so the pipeline writeback is safe.
    for t in range(tm - n_live, tm):
        wait_row(t, t % nslots)


# --------------------------------------------------------------------------------------
# Path 2: small vocabulary -> table resident in VMEM, one-hot MXU gather.
# --------------------------------------------------------------------------------------
def _vmem_onehot_kernel(ids_ref, table_ref, out_ref):
    """ids_ref: (tm,1) int32; table_ref: (V,Dp) f32 (VMEM resident); out_ref: (tm,Dp)."""
    ids = ids_ref[...]                                              # (tm, 1)
    vocab = table_ref.shape[0]
    col = lax.broadcasted_iota(jnp.int32, (ids.shape[0], vocab), 1)  # (tm, V)
    onehot = (ids == col).astype(table_ref.dtype)                    # exact 0/1
    out_ref[...] = jnp.dot(
        onehot, table_ref[...],
        preferred_element_type=jnp.float32,
        precision=lax.Precision.HIGHEST,
    ).astype(out_ref.dtype)


# --------------------------------------------------------------------------------------
# Wrapper (all reshapes / padding / slicing live here, outside the kernels).
# --------------------------------------------------------------------------------------
def embedding_forward(ids, table_padded, n_d, *, tokens_per_tile=128,
                      path="auto", vmem_table_limit=4 * 1024 * 1024,
                      dma_slots=16):
    """ids: (B, S) int; table_padded: (V, Dp) f32 with Dp a multiple of 128.

    Returns (B, S, n_d) f32 == table[:, :n_d][ids]  (same as PyTorch nn.Embedding).
    path: "auto" | "vmem" | "dma".
    """
    B, S = ids.shape
    V, Dp = table_padded.shape
    assert Dp % 128 == 0, "pad the embedding dim to a multiple of 128 at init"
    assert dma_slots > 0 and (dma_slots & (dma_slots - 1)) == 0, "dma_slots must be 2^k"

    T = B * S
    # Token tile: multiple of 8, at most tokens_per_tile, never bigger than needed.
    tm = min(max((tokens_per_tile // 8) * 8, 8), pl.cdiv(T, 8) * 8)
    T_pad = pl.cdiv(T, tm) * tm

    # Flatten + clamp + pad ids once in the wrapper (tiny int32 vector, free).
    # TODO(synk): PyTorch nn.Embedding raises on out-of-range ids; we clamp instead.
    flat_ids = jnp.clip(ids.reshape(T).astype(jnp.int32), 0, V - 1)
    if T_pad != T:
        flat_ids = jnp.pad(flat_ids, (0, T_pad - T))

    table_bytes = V * Dp * table_padded.dtype.itemsize
    use_vmem = (path == "vmem") or (path == "auto" and table_bytes <= vmem_table_limit)

    if use_vmem:
        # Small table: keep it VMEM-resident (constant index_map -> fetched once),
        # gather with a one-hot MXU matmul per token tile.
        out_flat = pl.pallas_call(
            _vmem_onehot_kernel,
            out_shape=jax.ShapeDtypeStruct((T_pad, Dp), table_padded.dtype),
            grid=(T_pad // tm,),
            in_specs=[
                pl.BlockSpec((tm, 1), lambda i: (i, 0)),     # ids column (VMEM)
                pl.BlockSpec((V, Dp), lambda i: (0, 0)),     # full table, stays resident
            ],
            out_specs=pl.BlockSpec((tm, Dp), lambda i: (i, 0)),
            compiler_params=pltpu.CompilerParams(
                dimension_semantics=("parallel",),
            ),
        )(flat_ids.reshape(T_pad, 1), table_padded)
    else:
        # GloVe-scale table: HBM-resident, per-row DMA gather straight into the
        # lane-dense output block, rotating semaphore pool for overlap.
        # TODO(synk): flat_ids is scalar-prefetched into SMEM; for very large B*S
        # chunk the wrapper call (SMEM is small) instead of one giant prefetch.
        kernel = functools.partial(_dma_gather_kernel, tm=tm, nslots=dma_slots)
        out_flat = pl.pallas_call(
            kernel,
            out_shape=jax.ShapeDtypeStruct((T_pad, Dp), table_padded.dtype),
            grid_spec=pltpu.PrefetchScalarGridSpec(
                num_scalar_prefetch=1,                       # flat ids -> SMEM
                grid=(T_pad // tm,),
                in_specs=[
                    pl.BlockSpec(memory_space=pl.ANY),       # table stays in HBM
                ],
                out_specs=pl.BlockSpec((tm, Dp), lambda i, ids: (i, 0)),
                scratch_shapes=[
                    pltpu.SemaphoreType.DMA((dma_slots,)),   # rotating DMA sem pool
                ],
            ),
            compiler_params=pltpu.CompilerParams(
                dimension_semantics=("parallel",),           # megacore-split token tiles
                vmem_limit_bytes=32 * 1024 * 1024,
            ),
        )(flat_ids, table_padded)

    # TODO(synk): this slice/reshape is an extra XLA pass over the output at large T;
    # heavy consumers should take the padded (T_pad, Dp) slab and fuse the slice.
    return out_flat[:T, :n_d].reshape(B, S, n_d)


if __name__ == "__main__":
    key = jax.random.PRNGKey(0)
    k_pre, k_init, k_ids, k_ids2 = jax.random.split(key, 4)

    # ---- deterministic parameter construction (mirrors EmbeddingLayer.__init__) ----
    n_words = 38                    # len(word_list) of synthetic "pretrained" embeddings
    n_d = 100                       # embedding dim (GloVe default)
    n_V = n_words + 2               # + <oov> + <pad>

    # synthetic pretrained embedding_matrix (stands in for GloVe rows)
    pretrained = jax.random.normal(k_pre, (n_words, n_d), dtype=jnp.float32)

    # nn.Embedding(n_V, n_d).weight.data.uniform_(-0.25, 0.25)
    weight = jax.random.uniform(k_init, (n_V, n_d),
                                minval=-0.25, maxval=0.25, dtype=jnp.float32)
    # weight.data[:len(word_list)].copy_(embedding_matrix)
    weight = weight.at[:n_words].set(pretrained)
    # normalize=True: weight.data.div_(row L2 norms)
    norms = jnp.sqrt(jnp.sum(weight * weight, axis=1, keepdims=True))
    weight = weight / norms

    # Pad the embedding dim once at init to a lane-dense 128 (padding is sliced off
    # again in the wrapper, so forward semantics are unchanged).
    D_PAD = 128
    table_padded = jnp.pad(weight, ((0, 0), (0, D_PAD - n_d)))

    # ---- forward 1: small shapes, auto dispatch (table is 20 KiB -> VMEM one-hot path)
    B, S = 2, 8
    ids = jax.random.randint(k_ids, (B, S), 0, n_V, dtype=jnp.int32)
    out_small = jax.block_until_ready(embedding_forward(ids, table_padded, n_d))
    ref_small = weight[ids]
    assert out_small.shape == (B, S, n_d) and out_small.dtype == jnp.float32
    np.testing.assert_allclose(np.asarray(out_small), np.asarray(ref_small),
                               rtol=1e-5, atol=1e-6)

    # ---- forward 2: force the HBM DMA-gather path (GloVe-scale path), including the
    # rotating-semaphore steady state (tm=128 > 16 slots).
    B2, S2 = 2, 128
    ids2 = jax.random.randint(k_ids2, (B2, S2), 0, n_V, dtype=jnp.int32)
    out_dma = jax.block_until_ready(
        embedding_forward(ids2, table_padded, n_d, path="dma"))
    ref_dma = weight[ids2]
    assert out_dma.shape == (B2, S2, n_d) and out_dma.dtype == jnp.float32
    np.testing.assert_allclose(np.asarray(out_dma), np.asarray(ref_dma),
                               rtol=1e-6, atol=1e-6)

    print("KERNEL_OK")
</pallas_src>

<mosaic_0001>
module attributes {stable_mosaic.version = 11 : i64} {
  func.func @_vmem_onehot_kernel(%arg0: i32, %arg1: memref<16x1xi32, #tpu.memory_space<vmem>>, %arg2: memref<40x128xf32, #tpu.memory_space<vmem>>, %arg3: memref<16x128xf32, #tpu.memory_space<vmem>>) attributes {dimension_semantics = [#tpu.dimension_semantics<parallel>], iteration_bounds = array<i64: 1>, scalar_prefetch = 0 : i64, scratch_operands = 0 : i64, tpu.core_type = #tpu.core_type<tc>, window_params = [{transform_indices = @transform_0, window_bounds = array<i64: 16, 1>}, {pipeline_mode = #tpu.pipeline_mode<synchronous>, transform_indices = @transform_1, window_bounds = array<i64: 40, 128>}, {transform_indices = @transform_2, window_bounds = array<i64: 16, 128>}]} {
    %c0 = arith.constant 0 : index
    %c0_0 = arith.constant 0 : index
    %0 = vector.load %arg1[%c0, %c0_0] : memref<16x1xi32, #tpu.memory_space<vmem>>, vector<16x1xi32>
    %1 = tpu.iota {dimensions = array<i32: 1>} : vector<16x40xi32>
    %2 = vector.broadcast %0 : vector<16x1xi32> to vector<16x40xi32>
    %3 = arith.cmpi eq, %2, %1 : vector<16x40xi32>
    %4 = arith.extui %3 : vector<16x40xi1> to vector<16x40xi32>
    %5 = arith.sitofp %4 : vector<16x40xi32> to vector<16x40xf32>
    %c0_1 = arith.constant 0 : index
    %c0_2 = arith.constant 0 : index
    %6 = vector.load %arg2[%c0_1, %c0_2] : memref<40x128xf32, #tpu.memory_space<vmem>>, vector<40x128xf32>
    %cst = arith.constant dense<0.000000e+00> : vector<16x128xf32>
    %7 = tpu.matmul %5, %6, %cst {dimension_numbers = #tpu.dot_dimension_numbers<[1], [0], [0], [1], [0, 0, 1, 1], [], []>, precision = #tpu.contract_precision<fp32>} : vector<16x40xf32>, vector<40x128xf32>, vector<16x128xf32> -> vector<16x128xf32>
    %c0_3 = arith.constant 0 : index
    %c0_4 = arith.constant 0 : index
    %8 = vector.load %arg3[%c0_3, %c0_4] : memref<16x128xf32, #tpu.memory_space<vmem>>, vector<16x128xf32>
    tpu.vector_store %arg3[%c0_3, %c0_4], %7 {strides = array<i32>} : memref<16x128xf32, #tpu.memory_space<vmem>>, vector<16x128xf32>,
    return
  }
  func.func @transform_0(%arg0: i32) -> (i32, i32) {
    %c0_i32 = arith.constant 0 : i32
    %c0_i32_0 = arith.constant 0 : i32
    return %arg0, %c0_i32 : i32, i32
  }
  func.func @transform_1(%arg0: i32) -> (i32, i32) {
    %c0_i32 = arith.constant 0 : i32
    %c0_i32_0 = arith.constant 0 : i32
    %c0_i32_1 = arith.constant 0 : i32
    return %c0_i32, %c0_i32_0 : i32, i32
  }
  func.func @transform_2(%arg0: i32) -> (i32, i32) {
    %c0_i32 = arith.constant 0 : i32
    %c0_i32_0 = arith.constant 0 : i32
    return %arg0, %c0_i32 : i32, i32
  }
}

</mosaic_0001>

<bundles_post_ra>
// kernel: tpu_custom_call.1
= control target key start
LH: loop header
LB: loop body
LE: loop exit
PB: predicated region body
PF: predicated region fallthrough
CT: control target
= control target key end

     0   :  { %7 = vsyncpa [#allocation3], 0  ;;  %s940_s0 = inlined_call_operand.vmem [shape: s32[16,1], index: 0, kind: input, shape index: {}]   ;;  %s941_s1 = inlined_call_operand.hbm [shape: f32[40,128], index: 1, kind: input, shape index: {}]   ;;  %s942_s2 = inlined_call_operand.hbm [shape: f32[16,128], index: 2, kind: output, shape index: {}]  }
   0x1   :  { %8 = vsyncpa [#allocation4], 0  ;;  %s793_s9 = smov [#allocation2]  }
   0x2   :  { %s16_s10 = sshll.u32 %s793_s9, 4  ;;  %s17_s10 = int_to_ptr.vmem [resolvable:$true] %s16_s10 }
   0x3   :  { %s757_s11 = scalar_lea.vmem %s17_s10, 640  ;;  %p762_p1 = scmp.lt.s32.totalorder %s17_s10, %s17_s10 }
   0x4   :  { %p758_p0 = scmp.ne.s32.totalorder %s17_s10, %s757_s11  ;;  %p763_p2 = scmp.lt.s32.totalorder %s757_s11, %s757_s11 }
   0x6   :  { %p764_p3 = por %p763_p2, %p762_p1 }
   0x8   :  { %p765_p4 = pnand %p764_p3, %p758_p0 }
   0xa   :  { %768 = shalt.err (!%p765_p4)
}
   0xb   :  { %s794_s12 = smov 128   ;;  %s795_s13 = smov 8  }
   0xc   :  { %22 = dma.hbm_to_vmem [thread:$0]  %s941_s1, 640, %s17_s10, [#allocation3], %s794_s12, %s794_s12, %s795_s13  }
   0xd   :  { %789 = dma.done.wait [#allocation3], 640  }
   0xe   :  { %790 = vsyncadd [#allocation3], 4294966656  ;;  %v796_v0 = vmov 0   ;;  %v26_v1 = vld [vmem:[%s940_s0] sm:$0xff]  ;;  %v45_v4 = vld [vmem:[#allocation2 + $0x18] sm:$0xff]  ;;  %v28_v33 = vlaneseq  ;;  %vm47_vm0 = vcmask 326656  }
   0xf   :  { %748 = vset.pattern.permute.xlu0 %v796_v0  ;;  %v46_v2 = vld [vmem:[#allocation2 + $0x20] sm:$0xff]  ;;  %v44_v5 = vld [vmem:[#allocation2 + $0x10] sm:$0xff]  ;;  %v43_v6 = vld [vmem:[#allocation2 + $0x8] sm:$0xff]  ;;  %v828_v8 = vand.u32 4294901760, %v45_v4  ;;  %v797_v36 = vmov 0.0  }
  0x10   :  { %31 = vperm.xlu0 %748, %v26_v1   ;;  %v823_v3 = vand.u32 4294901760, %v46_v2  ;;  %v27_v7 = vld [vmem:[%s940_s0 + $0x8] sm:$0xff]  ;;  %v830_v9 = vand.u32 4294901760, %v44_v5  ;;  %v832_v10 = vand.u32 4294901760, %v43_v6  ;;  %v42_v11 = vld [vmem:[#allocation2] sm:$0xff]  ;;  %v29_v34 = vand.u32 127, %v28_v33 }
  0x11   :  { %v837_v13 = vand.u32 4294901760, %v42_v11  ;;  %v841_v14 = vsub.f32 %v45_v4, %v828_v8  ;;  %s798_s0 = smov [#allocation5]  }
  0x12   :  { %v835_v12 = vsub.f32 %v46_v2, %v823_v3  ;;  %664 = vmatprep.subr.mxu0 %v823_v3  ;;  %v844_v15 = vsub.f32 %v44_v5, %v830_v9  ;;  %v847_v16 = vsub.f32 %v43_v6, %v832_v10  ;;  %s602_s1 = sshll.u32 %s798_s0, 4  ;;  %s603_s1 = int_to_ptr.vmem [resolvable:$true] %s602_s1 }
  0x13   :  { %665 = vmatpush3.msra.mxu0 %v823_v3  ;;  %v854_v18 = vsub.f32 %v42_v11, %v837_v13  ;;  %v858_v19 = vand.u32 4294901760, %v841_v14  ;;  %s769_s20 = scalar_lea.vmem %s603_s1, 256  ;;  %p774_p6 = scmp.lt.s32.totalorder %s603_s1, %s603_s1 }
  0x14   :  { %34 = vperm.xlu0 %748, %v27_v7   ;;  %v851_v17 = vand.u32 4294901760, %v835_v12  ;;  %666 = vmatprep.subr.mxu0 %v828_v8  ;;  %v861_v20 = vand.u32 4294901760, %v844_v15  ;;  %v864_v21 = vand.u32 4294901760, %v847_v16  ;;  %p770_p5 = scmp.ne.s32.totalorder %s603_s1, %s769_s20  ;;  %p775_p7 = scmp.lt.s32.totalorder %s769_s20, %s769_s20 }
  0x15   :  { %667 = vmatpush3.msra.mxu0 %v828_v8  ;;  %v870_v23 = vand.u32 4294901760, %v854_v18  ;;  %v177_v24 = vsub.f32 %v841_v14, %v858_v19 }
  0x16   :  { %v170_v22 = vsub.f32 %v835_v12, %v851_v17  ;;  %668 = vmatprep.subr.mxu0 %v830_v9  ;;  %v184_v25 = vsub.f32 %v844_v15, %v861_v20  ;;  %v191_v27 = vsub.f32 %v847_v16, %v864_v21  ;;  %p776_p8 = por %p775_p7, %p774_p6 }
  0x17   :  { %669 = vmatpush3.msra.mxu0 %v830_v9  ;;  %v178_v28 = vand.u32 4294901760, %v177_v24  ;;  %v198_v30 = vsub.f32 %v854_v18, %v870_v23 }
  0x18   :  { %v171_v26 = vand.u32 4294901760, %v170_v22  ;;  %670 = vmatprep.subr.mxu0 %v832_v10  ;;  %v185_v29 = vand.u32 4294901760, %v184_v25  ;;  %v192_v31 = vand.u32 4294901760, %v191_v27  ;;  %p777_p9 = pnand %p776_p8, %p770_p5 }
  0x19   :  { %671 = vmatpush3.msra.mxu0 %v832_v10  ;;  %v199_v32 = vand.u32 4294901760, %v198_v30 }
  0x1a   :  { %677 = vmatprep.subr.mxu1 %v171_v26  ;;  %672 = vmatprep.subr.mxu0 %v837_v13 }
  0x1b   :  { %678 = vmatpush3.msra.mxu1 %v171_v26  ;;  %673 = vmatpush3.msra.mxu0 %v837_v13 }
  0x1c   :  { %679 = vmatprep.subr.mxu1 %v178_v28  ;;  %690 = vmatprep.subr.mxu0 %v835_v12 }
  0x1d   :  { %680 = vmatpush3.msra.mxu1 %v178_v28 }
  0x1e   :  { %681 = vmatprep.subr.mxu1 %v185_v29 }
  0x1f   :  { %682 = vmatpush3.msra.mxu1 %v185_v29 }
  0x20   :  { %683 = vmatprep.subr.mxu1 %v192_v31 }
  0x21   :  { %684 = vmatpush3.msra.mxu1 %v192_v31 }
  0x22   :  { %685 = vmatprep.subr.mxu1 %v199_v32 }
  0x23   :  { %686 = vmatpush3.msra.mxu1 %v199_v32 }
  0x24   :  { %703 = vmatprep.subr.mxu1 %v823_v3 }
  0x8b   :  { %v32_v35 = vpop.permute.xlu0 %31 }
  0x8c   :  { %vm36_vm1 = vcmp.eq.s32.totalorder %v32_v35, %v29_v34 }
  0x8d   :  { %v614_v37 = vsel %vm36_vm1, 1.0, %v797_v36 }
  0x8e   :  { %v49_v38 = vsel %vm47_vm0, %v614_v37, 0  ;;  %687 = vmatprep.mubr.msk.f32.mxu1 %vm47_vm0, %v614_v37 }
  0x8f   :  { %v125_v39 = vsub.f32 %v49_v38, %v49_v38  ;;  %v35_v40 = vpop.permute.xlu0 %34 }
  0x90   :  { %vm37_vm2 = vcmp.eq.s32.totalorder %v35_v40, %v29_v34 }
  0x91   :  { %v615_v41 = vsel %vm37_vm2, 1.0, %v797_v36  ;;  %v126_v42 = vand.u32 4294901760, %v125_v39 }
  0x92   :  { %v52_v43 = vsel %vm47_vm0, %v615_v41, 0  ;;  %688 = vmatmul.mubr.msk.f32.vlgmr.msra.gmra.mxu1 %vm47_vm0, %v615_v41 }
  0x93   :  { %v135_v44 = vsub.f32 %v52_v43, %v52_v43  ;;  %704 = vmatpush3.msra.mxu1 %v823_v3  ;;  %713 = vmatprep.mubr.f32.mxu1 %v126_v42  ;;  %v127_v45 = vsub.f32 %v125_v39, %v126_v42 }
  0x94   :  { %705 = vmatprep.subr.mxu1 %v828_v8 }
  0x95   :  { %706 = vmatpush3.msra.mxu1 %v828_v8  ;;  %v128_v46 = vand.u32 4294901760, %v127_v45  ;;  %v136_v47 = vand.u32 4294901760, %v135_v44 }
  0x96   :  { %707 = vmatprep.subr.mxu1 %v830_v9 }
  0x97   :  { %708 = vmatpush3.msra.mxu1 %v830_v9  ;;  %674 = vmatprep.mubr.f32.mxu0 %v128_v46  ;;  %v137_v48 = vsub.f32 %v135_v44, %v136_v47 }
  0x98   :  { %709 = vmatprep.subr.mxu1 %v832_v10 }
  0x99   :  { %710 = vmatpush3.msra.mxu1 %v832_v10  ;;  %v138_v49 = vand.u32 4294901760, %v137_v48 }
  0x9a   :  { %711 = vmatprep.subr.mxu1 %v837_v13 }
  0x9b   :  { %712 = vmatpush3.msra.mxu1 %v837_v13  ;;  %675 = vmatmul.mubr.f32.vlgmr.msra.gmra.mxu0 %v138_v49 }
  0x9c   :  { %691 = vmatpush3.msra.mxu0 %v835_v12  ;;  %714 = vmatmul.mubr.f32.vlgmr.msra.gmra.mxu1 %v136_v47 }
  0x9d   :  { %729 = vmatprep.subr.mxu1 %v823_v3  ;;  %692 = vmatprep.subr.mxu0 %v841_v14 }
  0x9e   :  { %700 = vmatprep.mubr.f32.mxu0 %v125_v39  ;;  %730 = vmatpush3.msra.mxu1 %v823_v3 }
  0x9f   :  { %739 = vmatprep.mubr.msk.f32.mxu1 %vm47_vm0, %v614_v37  ;;  %693 = vmatpush3.msra.mxu0 %v841_v14 }
  0xa0   :  { %731 = vmatprep.subr.mxu1 %v828_v8  ;;  %694 = vmatprep.subr.mxu0 %v844_v15 }
  0xa1   :  { %732 = vmatpush3.msra.mxu1 %v828_v8  ;;  %695 = vmatpush3.msra.mxu0 %v844_v15 }
  0xa2   :  { %733 = vmatprep.subr.mxu1 %v830_v9  ;;  %696 = vmatprep.subr.mxu0 %v847_v16 }
  0xa3   :  { %734 = vmatpush3.msra.mxu1 %v830_v9  ;;  %697 = vmatpush3.msra.mxu0 %v847_v16 }
  0xa4   :  { %735 = vmatprep.subr.mxu1 %v832_v10  ;;  %698 = vmatprep.subr.mxu0 %v854_v18 }
  0xa5   :  { %736 = vmatpush3.msra.mxu1 %v832_v10  ;;  %699 = vmatpush3.msra.mxu0 %v854_v18 }
  0xa6   :  { %737 = vmatprep.subr.mxu1 %v837_v13  ;;  %701 = vmatmul.mubr.f32.vlgmr.msra.gmra.mxu0 %v135_v44 }
  0xa7   :  { %716 = vmatprep.subr.mxu0 %v851_v17  ;;  %738 = vmatpush3.msra.mxu1 %v837_v13 }
  0xa8   :  { %717 = vmatpush3.msra.mxu0 %v851_v17  ;;  %726 = vmatprep.mubr.msk.f32.mxu0 %vm47_vm0, %v614_v37 }
  0xa9   :  { %740 = vmatmul.mubr.msk.f32.vlgmr.msra.gmra.mxu1 %vm47_vm0, %v615_v41  ;;  %718 = vmatprep.subr.mxu0 %v858_v19 }
  0xaa   :  { %719 = vmatpush3.msra.mxu0 %v858_v19 }
  0xab   :  { %720 = vmatprep.subr.mxu0 %v861_v20 }
  0xac   :  { %721 = vmatpush3.msra.mxu0 %v861_v20 }
  0xad   :  { %722 = vmatprep.subr.mxu0 %v864_v21 }
  0xae   :  { %723 = vmatpush3.msra.mxu0 %v864_v21 }
  0xaf   :  { %724 = vmatprep.subr.mxu0 %v870_v23 }
  0xb0   :  { %725 = vmatpush3.msra.mxu0 %v870_v23 }
  0xb1   :  { %727 = vmatmul.mubr.msk.f32.vlgmr.msra.gmra.mxu0 %vm47_vm0, %v615_v41 }
 0x152   :  { %v689_v51 = vpop.f32.mrf.mxu1 }
 0x154   :  { %v236_v54 = vpop.f32.mrf.mxu1 }
 0x15b   :  { %v676_v50 = vpop.f32.mrf.mxu0 }
 0x15c   :  { %v243_v55 = vadd.f32 %v689_v51, %v676_v50  ;;  %v715_v56 = vpop.f32.mrf.mxu1 }
 0x15d   :  { %v130_v52 = vpop.f32.mrf.mxu0 }
 0x15e   :  { %v237_v58 = vadd.f32 %v236_v54, %v130_v52  ;;  %v409_v61 = vpop.f32.mrf.mxu1 }
 0x166   :  { %v702_v53 = vpop.f32.mrf.mxu0 }
 0x167   :  { %v332_v59 = vadd.f32 %v702_v53, %v243_v55 }
 0x168   :  { %v324_v57 = vpop.f32.mrf.mxu0 }
 0x169   :  { %v325_v60 = vadd.f32 %v324_v57, %v237_v58  ;;  %v418_v62 = vadd.f32 %v715_v56, %v332_v59  ;;  %v741_v63 = vpop.f32.mrf.mxu1 }
 0x16b   :  { %v410_v2 = vadd.f32 %v409_v61, %v325_v60  ;;  %v585_v6 = vpop.f32.mrf.mxu1 }
 0x171   :  { %v728_v0 = vpop.f32.mrf.mxu0 }
 0x172   :  { %v510_v1 = vadd.f32 %v728_v0, %v418_v62 }
 0x173   :  { %v503_v3 = vpop.f32.mrf.mxu0 }
 0x174   :  { %v592_v4 = vadd.f32 %v741_v63, %v510_v1  ;;  %v504_v5 = vadd.f32 %v503_v3, %v410_v2 }
 0x176   :  { %596 = vst [vmem:[#allocation5 + $0x8] sm:$0xff] %v592_v4  ;;  %v586_v7 = vadd.f32 %v585_v6, %v504_v5 }
 0x178   :  { %595 = vst [vmem:[#allocation5] sm:$0xff] %v586_v7 }
 0x179   :  { %780 = shalt.err (!%p777_p9)
}
 0x17a   :  { %608 = dma.vmem_to_hbm [thread:$0]  %s603_s1, 256, %s942_s2, [#allocation4], %s794_s12, %s794_s12, %s795_s13  }
 0x17b   :  { %791 = dma.done.wait [#allocation4], 256  }
 0x17c   :  { %792 = vsyncadd [#allocation4], 4294967040 }
 0x17d   :  { %612 = vsyncpa [#allocation3], 1 }
 0x17e   :  { %613 = vsyncpa [#allocation4], 1 }

</bundles_post_ra>
